<compile_context>
chip_gen: v6e
topology: v6e:2x2x1
jax: 0.10.0
libtpu: 0.0.40
codegen_flags: <defaults>
</compile_context>

<pallas_src>
import functools

import jax
import jax.numpy as jnp
from jax import lax
from jax.experimental import pallas as pl
from jax.experimental.pallas import tpu as pltpu


_VMEM_LIMIT_BYTES = 48 * 1024 * 1024     # safe headroom on v7x (64 MiB physical/TC)
_PRIOR_INPUT_BUDGET = 32 * 1024 * 1024   # 2 inputs x 2 pipeline buffers of the prior
_INIT_TILE_ROWS = 1024                   # rows per grid step for the init kernels


def _pick_groups(batch, season, pred_len):
    """Batch rows packed per lane group so init stores are lane-dense.

    Must divide the batch; packed lane width kept modest (<= 512 lanes ->
    small VMEM blocks, bounded in-kernel lane shuffles); stop early once the
    packed output width is a multiple of 128 lanes (fully unmasked vst).
    """
    g = 1
    while True:
        g2 = g * 2
        if batch % g2 != 0 or g2 > 32 or g2 * max(season, pred_len) > 512:
            return g
        g = g2
        if (g * pred_len) % 128 == 0:
            return g


# ----------------------------------------------------------------------------
# Kernel 1a: seasonal-naive init (ctx >= season).  After scale cancellation:
#   pred[b, k] = past_target[b, ctx - season + k % season]
# Input is the pre-sliced, lane-0-aligned season window with `groups` batch rows
# packed along lanes: win[r, g*season:(g+1)*season] = window[r*groups + g, :].
# ----------------------------------------------------------------------------
def _seasonal_init_kernel(win_ref, out_ref, *, season, pred_len, groups):
    x = win_ref[...]                                      # (T, groups*season)
    reps, rem = divmod(pred_len, season)
    pieces = []
    for g in range(groups):
        w = x[:, g * season:(g + 1) * season] if groups > 1 else x
        pieces.extend([w] * reps)
        if rem:
            pieces.append(w[:, :rem])
    out_ref[...] = pieces[0] if len(pieces) == 1 else jnp.concatenate(pieces, axis=1)


# ----------------------------------------------------------------------------
# Kernel 1b: short-context init (ctx < season).  After scale cancellation:
#   pred[b, k] = mean(past_target[b, :ctx])
# ----------------------------------------------------------------------------
def _mean_init_kernel(ctx_ref, out_ref, *, pred_len):
    x = ctx_ref[...].astype(jnp.float32)                  # (T, ctx)
    m = jnp.mean(x, axis=1, keepdims=True)                # (T, 1)
    out_ref[...] = jnp.broadcast_to(m, (x.shape[0], pred_len)).astype(out_ref.dtype)


def refiner_init_pallas(past_target, *, pred_len, season_length):
    """Seasonal-naive / context-mean horizon init (scale already cancelled)."""
    b, ctx = past_target.shape
    dtype = past_target.dtype

    if ctx >= season_length:
        groups = _pick_groups(b, season_length, pred_len)
        rows = b // groups
        # Lane-0-aligned window slice + free row-major packing reshape.
        window = past_target[:, ctx - season_length:].reshape(
            rows, groups * season_length)
        tile = rows if rows <= _INIT_TILE_ROWS else _INIT_TILE_ROWS
        kernel = functools.partial(_seasonal_init_kernel, season=season_length,
                                   pred_len=pred_len, groups=groups)
        out = pl.pallas_call(
            kernel,
            out_shape=jax.ShapeDtypeStruct((rows, groups * pred_len), dtype),
            grid=(pl.cdiv(rows, tile),),
            in_specs=[pl.BlockSpec((tile, groups * season_length),
                                   lambda i: (i, 0))],
            out_specs=pl.BlockSpec((tile, groups * pred_len), lambda i: (i, 0)),
            compiler_params=pltpu.CompilerParams(
                dimension_semantics=("parallel",)),
        )(window)
        return out.reshape(b, pred_len)

    # Context shorter than one season: horizon = mean of the context.
    tile = b if b <= _INIT_TILE_ROWS else _INIT_TILE_ROWS
    kernel = functools.partial(_mean_init_kernel, pred_len=pred_len)
    return pl.pallas_call(
        kernel,
        out_shape=jax.ShapeDtypeStruct((b, pred_len), dtype),
        grid=(pl.cdiv(b, tile),),
        in_specs=[pl.BlockSpec((tile, ctx), lambda i: (i, 0))],
        out_specs=pl.BlockSpec((tile, pred_len), lambda i: (i, 0)),
        compiler_params=pltpu.CompilerParams(
            dimension_semantics=("parallel",)),
    )(past_target)


# ----------------------------------------------------------------------------
# Kernel 2: quantile (pinball) guidance prior.
#   prior = scale * sum( q*e + max(0, -e) ),  e = target - prediction,
#   q(row) = ((row % num_samples) + 1) / (num_samples + 1)
# Each grid step writes its own partial sum ("parallel" semantics, no resident
# accumulator); the wrapper sums the partials and applies `scale` once.
# ----------------------------------------------------------------------------
def _quantile_prior_kernel(y_pred_ref, y_tgt_ref, out_ref, *,
                           num_samples, n_rows, tile_rows):
    i = pl.program_id(0)
    rows = i * tile_rows + lax.broadcasted_iota(jnp.int32, (tile_rows, 1), 0)
    q = ((rows % num_samples) + 1).astype(jnp.float32) * (1.0 / (num_samples + 1.0))

    e = y_tgt_ref[...].astype(jnp.float32) - y_pred_ref[...].astype(jnp.float32)
    # max(q*e, (q-1)*e) == q*e + max(0, -e)  (one fewer vmul per element)
    loss = q * e + jnp.maximum(-e, 0.0)
    # Mask rows of a partial last tile; keep it a select so OOB garbage
    # (incl. NaN/Inf) cannot propagate into the sum.
    loss = jnp.where(rows < n_rows, loss, 0.0)
    out_ref[...] = jnp.sum(loss).reshape(1, 1, 1)


def quantile_prior_pallas(y_prediction, y_target, *, num_samples, scale=1.0):
    """Refiner.prior with guidance='quantile'. Inputs: (BN, length, ch)."""
    assert y_prediction.shape == y_target.shape
    bn = y_prediction.shape[0]
    yp = y_prediction.reshape(bn, -1)        # native dtype; cast in-kernel
    yt = y_target.reshape(bn, -1)
    d = yp.shape[1]

    # Tile rows derived from the VMEM budget: 2 inputs x 2 pipeline buffers.
    itemsize = yp.dtype.itemsize
    tile = _PRIOR_INPUT_BUDGET // (4 * d * itemsize)
    tile = max(8, min(2048, (tile // 8) * 8))
    if bn <= tile:
        tile = bn
    num_tiles = pl.cdiv(bn, tile)

    kernel = functools.partial(_quantile_prior_kernel,
                               num_samples=int(num_samples),
                               n_rows=bn, tile_rows=tile)
    partials = pl.pallas_call(
        kernel,
        out_shape=jax.ShapeDtypeStruct((num_tiles, 1, 1), jnp.float32),
        grid=(num_tiles,),
        in_specs=[pl.BlockSpec((tile, d), lambda i: (i, 0)),
                  pl.BlockSpec((tile, d), lambda i: (i, 0))],
        out_specs=pl.BlockSpec((1, 1, 1), lambda i: (i, 0, 0)),
        compiler_params=pltpu.CompilerParams(
            dimension_semantics=("parallel",),
            vmem_limit_bytes=_VMEM_LIMIT_BYTES),
    )(yp, yt)
    return jnp.float32(scale) * jnp.sum(partials)


# ----------------------------------------------------------------------------
# End-to-end "Refiner.forward" (glue in plain JAX, hot path in Pallas).
# Returns (batch, num_samples, prediction_length), matching the PyTorch ref.
# ----------------------------------------------------------------------------
def refiner_forward(past_target, past_observed_values, *, prediction_length,
                    num_samples, season_length):
    # Scale cancellation: _extract_features divides by the mean-abs scale, the
    # init copies that scaled context, and the output multiplies by the same
    # scale -> with refine()==identity the scaler cancels exactly, so the hot
    # path only reads past_target.
    del past_observed_values  # only consumed by the (cancelled) mean-abs scaler
    b = past_target.shape[0]

    # TODO(synk): model._extract_features side features, the external forecast
    # iterator `self.init`, and the abstract refine() (identity stand-in here)
    # have no in-kernel equivalent; the seasonal / context-mean init branch of
    # the reference forward is implemented (season_length stands in for
    # get_seasonality(model.freq)).
    pred_b = refiner_init_pallas(past_target, pred_len=prediction_length,
                                 season_length=season_length)          # (B, P)

    # refine() is identity -> every sample is identical; expose the sample axis
    # as a zero-copy broadcast instead of a repeat_interleave in HBM.
    return jnp.broadcast_to(pred_b[:, None, :],
                            (b, num_samples, prediction_length))


# ----------------------------------------------------------------------------
# Pure-JAX references (correctness checks only; mirror the PyTorch math,
# including the divide-then-multiply scaler round trip).
# ----------------------------------------------------------------------------
def _ref_forward(past_target, past_observed_values, *, prediction_length,
                 num_samples, season_length):
    b, ctx = past_target.shape
    denom = jnp.maximum(jnp.sum(past_observed_values, axis=1, keepdims=True), 1.0)
    scale = (jnp.sum(jnp.abs(past_target) * past_observed_values,
                     axis=1, keepdims=True) / denom) + 1e-3
    obs0 = past_target / scale
    if ctx >= season_length:
        idx = jnp.array([ctx - season_length + (k % season_length)
                         for k in range(prediction_length)], dtype=jnp.int32)
        init = obs0[:, idx]
    else:
        init = jnp.broadcast_to(jnp.mean(obs0, axis=1, keepdims=True),
                                (b, prediction_length))
    pred = init * scale
    return jnp.broadcast_to(pred[:, None, :], (b, num_samples, prediction_length))


def _ref_prior(y_prediction, y_target, *, num_samples, scale=1.0):
    bn = y_prediction.shape[0]
    q = (((jnp.arange(bn) % num_samples) + 1).astype(jnp.float32)
         / (num_samples + 1.0))[:, None, None]
    e = y_target - y_prediction
    return scale * jnp.sum(jnp.maximum(q * e, (q - 1.0) * e))


if __name__ == "__main__":
    B, NUM_SAMPLES, CTX, PRED_LEN = 2, 3, 24, 8
    SEASON_LENGTH = 4   # stand-in for get_seasonality(model.freq)
    L = CTX + PRED_LEN

    key = jax.random.PRNGKey(0)
    k1, k2, k3, k4 = jax.random.split(key, 4)
    past_target = jax.random.normal(k1, (B, CTX), jnp.float32) + 3.0
    past_observed_values = (jax.random.uniform(k2, (B, CTX)) > 0.1).astype(jnp.float32)

    # ---- forward, seasonal-naive branch (ctx >= season) ----
    pred = refiner_forward(
        past_target, past_observed_values,
        prediction_length=PRED_LEN, num_samples=NUM_SAMPLES,
        season_length=SEASON_LENGTH)
    pred = jax.block_until_ready(pred)
    assert pred.shape == (B, NUM_SAMPLES, PRED_LEN)
    pred_ref = _ref_forward(
        past_target, past_observed_values,
        prediction_length=PRED_LEN, num_samples=NUM_SAMPLES,
        season_length=SEASON_LENGTH)
    assert jnp.allclose(pred, pred_ref, atol=1e-5, rtol=1e-4)

    # ---- forward, short-context branch (ctx < season) ----
    pred2 = refiner_forward(
        past_target, past_observed_values,
        prediction_length=PRED_LEN, num_samples=NUM_SAMPLES,
        season_length=CTX + 1)
    pred2 = jax.block_until_ready(pred2)
    pred2_ref = _ref_forward(
        past_target, past_observed_values,
        prediction_length=PRED_LEN, num_samples=NUM_SAMPLES,
        season_length=CTX + 1)
    assert jnp.allclose(pred2, pred2_ref, atol=1e-5, rtol=1e-4)

    # ---- standalone Refiner.prior (quantile guidance kernel) ----
    BN = B * NUM_SAMPLES
    y_target = jax.random.normal(k3, (BN, L, 2), jnp.float32)
    y_prediction = y_target + 0.1 * jax.random.normal(k4, (BN, L, 2), jnp.float32)

    prior = quantile_prior_pallas(
        y_prediction, y_target, num_samples=NUM_SAMPLES, scale=1.0)
    prior = jax.block_until_ready(prior)
    prior_ref = _ref_prior(y_prediction, y_target, num_samples=NUM_SAMPLES, scale=1.0)
    assert jnp.allclose(prior, prior_ref, atol=1e-3, rtol=1e-4)

    print("KERNEL_OK")
</pallas_src>

<mosaic_0001>
module attributes {stable_mosaic.version = 11 : i64} {
  func.func @_seasonal_init_kernel(%arg0: i32, %arg1: memref<1x8xf32, #tpu.memory_space<vmem>>, %arg2: memref<1x16xf32, #tpu.memory_space<vmem>>) attributes {dimension_semantics = [#tpu.dimension_semantics<parallel>], iteration_bounds = array<i64: 1>, scalar_prefetch = 0 : i64, scratch_operands = 0 : i64, tpu.core_type = #tpu.core_type<tc>, window_params = [{transform_indices = @transform_0, window_bounds = array<i64: 1, 8>}, {transform_indices = @transform_1, window_bounds = array<i64: 1, 16>}]} {
    %c0 = arith.constant 0 : index
    %c0_0 = arith.constant 0 : index
    %0 = vector.load %arg1[%c0, %c0_0] : memref<1x8xf32, #tpu.memory_space<vmem>>, vector<1x8xf32>
    %1 = vector.extract_strided_slice %0 {offsets = [0, 0], sizes = [1, 4], strides = [1, 1]} : vector<1x8xf32> to vector<1x4xf32>
    %2 = vector.extract_strided_slice %0 {offsets = [0, 4], sizes = [1, 4], strides = [1, 1]} : vector<1x8xf32> to vector<1x4xf32>
    %3 = tpu.concatenate %1, %1, %2, %2 in 1 : vector<1x4xf32>, vector<1x4xf32>, vector<1x4xf32>, vector<1x4xf32> -> vector<1x16xf32>
    %c0_1 = arith.constant 0 : index
    %c0_2 = arith.constant 0 : index
    %4 = vector.load %arg2[%c0_1, %c0_2] : memref<1x16xf32, #tpu.memory_space<vmem>>, vector<1x16xf32>
    tpu.vector_store %arg2[%c0_1, %c0_2], %3 {strides = array<i32>} : memref<1x16xf32, #tpu.memory_space<vmem>>, vector<1x16xf32>,
    return
  }
  func.func @transform_0(%arg0: i32) -> (i32, i32) {
    %c0_i32 = arith.constant 0 : i32
    %c0_i32_0 = arith.constant 0 : i32
    return %arg0, %c0_i32 : i32, i32
  }
  func.func @transform_1(%arg0: i32) -> (i32, i32) {
    %c0_i32 = arith.constant 0 : i32
    %c0_i32_0 = arith.constant 0 : i32
    return %arg0, %c0_i32 : i32, i32
  }
}

</mosaic_0001>

<bundles_post_ra>
// kernel: tpu_custom_call.1
= control target key start
LH: loop header
LB: loop body
LE: loop exit
PB: predicated region body
PF: predicated region fallthrough
CT: control target
= control target key end

     0   :  { %6 = vsyncpa [#allocation3], 0  ;;  %s124_s0 = inlined_call_operand.hbm [shape: f32[1,8], index: 0, kind: input, shape index: {}]   ;;  %s125_s1 = inlined_call_operand.hbm [shape: f32[1,16], index: 1, kind: output, shape index: {}]  }
   0x1   :  { %7 = vsyncpa [#allocation4], 0  ;;  %s104_s6 = smov [#allocation2]  }
   0x2   :  { %s14_s7 = sshll.u32 %s104_s6, 4  ;;  %s15_s7 = int_to_ptr.vmem [resolvable:$true] %s14_s7 }
   0x3   :  { %s68_s8 = scalar_lea.vmem %s15_s7, 16  ;;  %s72_s9 = scalar_lea.vmem %s15_s7, 32 }
   0x4   :  { %p69_p0 = scmp.ne.s32.totalorder %s15_s7, %s68_s8  ;;  %p73_p1 = scmp.lt.s32.totalorder %s15_s7, %s15_s7 }
   0x5   :  { %p74_p2 = scmp.lt.s32.totalorder %s72_s9, %s68_s8 }
   0x7   :  { %p75_p3 = por %p74_p2, %p73_p1 }
   0x9   :  { %p76_p4 = pnand %p75_p3, %p69_p0 }
   0xb   :  { %79 = shalt.err (!%p76_p4)
}
   0xc   :  { %17 = dma.hbm_to_vmem [thread:$0]  %s124_s0, 16, %s15_s7, [#allocation3]  }
   0xd   :  { %100 = dma.done.wait [#allocation3], 16  }
   0xe   :  { %101 = vsyncadd [#allocation3], 4294967280  ;;  %v23_v0 = vlaneseq  ;;  %v21_v3 = vld [vmem:[#allocation2] sm:$0x1]  ;;  %s105_s12 = smov 4   ;;  %s106_s13 = smov 8  }
   0xf   :  { %vm33_vm0 = vcmask 31744   ;;  %vm35_vm1 = vcmask 64512   ;;  %s107_s14 = smov [#allocation5]   ;;  %vm37_vm2 = vcmask 97280   ;;  %vm39_vm3 = vcmask 122880  }
  0x10   :  { %v24_v1 = vshrl.u32 %v23_v0, 7  ;;  %s47_s15 = sshll.u32 %s107_s14, 4  ;;  %s48_s15 = int_to_ptr.vmem [resolvable:$true] %s47_s15 }
  0x11   :  { %s80_s0 = scalar_lea.vmem %s48_s15, 16  ;;  %s84_s16 = scalar_lea.vmem %s48_s15, 32 }
  0x12   :  { %v25_v2 = vsub.s32 0, %v24_v1  ;;  %p81_p5 = scmp.ne.s32.totalorder %s48_s15, %s80_s0  ;;  %p85_p6 = scmp.lt.s32.totalorder %s48_s15, %s48_s15 }
  0x13   :  { %p86_p7 = scmp.lt.s32.totalorder %s84_s16, %s80_s0 }
  0x14   :  { %v26_v4 = vrot.slane %v21_v3, %v25_v2 }
  0x15   :  { %p87_p8 = por %p86_p7, %p85_p6 }
  0x16   :  { %27 = vrot.lane.b32.xlu0 %v26_v4, %s105_s12 }
  0x17   :  { %p88_p9 = pnand %p87_p8, %p81_p5 }
  0x1a   :  { %30 = vrot.lane.b32.xlu0 %v26_v4, %s106_s13 }
  0x88   :  { %v28_v5 = vpop.permute.xlu0 %27 }
  0x89   :  { %v34_v6 = vsel %vm33_vm0, %v21_v3, %v28_v5 }
  0x8a   :  { %v36_v7 = vsel %vm35_vm1, %v34_v6, %v28_v5 }
  0x8c   :  { %v31_v8 = vpop.permute.xlu0 %30 }
  0x8d   :  { %v38_v9 = vsel %vm37_vm2, %v36_v7, %v31_v8 }
  0x8e   :  { %40 = vst.msk [vmem:[#allocation5] sm:$0x1] %vm39_vm3, %v38_v9 }
  0x8f   :  { %91 = shalt.err (!%p88_p9)
}
  0x90   :  { %50 = dma.vmem_to_hbm [thread:$0]  %s48_s15, 16, %s125_s1, [#allocation4]  }
  0x91   :  { %102 = dma.done.wait [#allocation4], 16  }
  0x92   :  { %103 = vsyncadd [#allocation4], 4294967280 }
  0x93   :  { %54 = vsyncpa [#allocation3], 1 }
  0x94   :  { %55 = vsyncpa [#allocation4], 1 }

</bundles_post_ra>
